<compile_context>
chip_gen: v7x
topology: tpu7x:2x2x1
jax: 0.10.0
libtpu: 0.0.40
codegen_flags: <defaults>
</compile_context>

<pallas_src>
import functools

import jax
import jax.numpy as jnp
import numpy as np
from jax import lax
from jax.experimental import pallas as pl
from jax.experimental.pallas import tpu as pltpu


def _round_up(x, m):
    return ((x + m - 1) // m) * m


def _edge_midpoint_kernel(idx_ref, x_ref, out_ref, *scratch, precision):
    """Grid: (batch b, edge-tile e, vertex-tile n); n is the reduction axis.

    idx_ref : VMEM (E_tile, 2) int32     edge endpoint vertex ids (global, -1 = pad)
    x_ref   : VMEM (1, tile_n, F_pad)    vertex-feature tile of batch b
    out_ref : VMEM (1, E_tile, F_pad)    edge midpoints (resident across n)
    scratch : optional VMEM (E_tile, F_pad) f32 accumulator
              (present only when the output dtype is not f32).
    """
    n = pl.program_id(2)
    n_last = pl.num_programs(2) - 1
    tile_n = x_ref.shape[1]
    e_tile = idx_ref.shape[0]

    x = x_ref[0]                                   # (tile_n, F_pad)

    # Tile-local endpoint ids: subtract on the tiny (E_tile, 2) operand instead
    # of adding n*tile_n to the full (E_tile, tile_n) iota.
    idx_local = idx_ref[...] - n * tile_n          # (E_tile, 2)
    idx0 = idx_local[:, 0:1]                       # (E_tile, 1)
    idx1 = idx_local[:, 1:2]                       # (E_tile, 1)
    vid = lax.broadcasted_iota(jnp.int32, (e_tile, tile_n), 1)

    # One-hot(+one-hot) selection weights in the input dtype; values {0,1,2}
    # are exactly representable in every float dtype (incl. bf16).
    sel = (vid == idx0).astype(x.dtype) + (vid == idx1).astype(x.dtype)

    # x[i] + x[j] for every edge of this tile, restricted to this vertex tile.
    partial = jnp.dot(sel, x, preferred_element_type=jnp.float32,
                      precision=precision)

    if scratch:
        # Low-precision output: accumulate in an f32 scratch, cast at the end.
        acc_ref = scratch[0]

        @pl.when(n == 0)
        def _init():
            acc_ref[...] = jnp.zeros_like(acc_ref)

        acc_ref[...] += partial

        @pl.when(n == n_last)
        def _finalize():
            out_ref[0, :, :] = (0.5 * acc_ref[...]).astype(out_ref.dtype)
    else:
        # f32 output: accumulate directly into the resident out block.
        @pl.when(n == 0)
        def _init():
            out_ref[...] = jnp.zeros_like(out_ref)

        out_ref[0, :, :] += partial

        @pl.when(n == n_last)
        def _finalize():
            out_ref[...] = out_ref[...] * 0.5


def graph_unpooling(inputs, unpool_idx, *, vmem_budget_bytes=None):
    """inputs: (B, N, F) float; unpool_idx: (E, 2) int -> (B, N+E, F)."""
    B, N, F = inputs.shape
    E = unpool_idx.shape[0]
    dtype = inputs.dtype
    itemsize = jnp.dtype(dtype).itemsize

    # f32 inputs need HIGHEST for exactness; bf16/f16 are exact with native MXU
    # precision + f32 accumulation (sel weights {0,1,2} are representable).
    f32_out = jnp.dtype(dtype) == jnp.dtype(jnp.float32)
    precision = lax.Precision.HIGHEST if f32_out else lax.Precision.DEFAULT
    use_scratch = not f32_out      # f32 outputs accumulate directly into out_ref

    # ---- generation-aware VMEM budget --------------------------------------
    try:
        vmem_cap = int(pltpu.get_tpu_info().vmem_capacity_bytes)
    except Exception:  # pragma: no cover - defensive fallback
        vmem_cap = 64 * 1024 * 1024          # conservative (v7x per-core)
    vmem_limit = min(vmem_cap // 2, 96 * 1024 * 1024)
    budget = (vmem_budget_bytes if vmem_budget_bytes is not None
              else (vmem_limit * 2) // 3)

    # ---- feature / edge / vertex tiling ------------------------------------
    F_pad = _round_up(F, 128)                    # lane-dense stores, full MXU N

    e_tiles = pl.cdiv(E, 256)                    # E_tile <= 256 on every gen
    E_tile = _round_up(pl.cdiv(E, e_tiles), 8)
    E_pad = e_tiles * E_tile

    # Resident bytes that do not depend on tile_n.
    fixed = (2 * E_tile * F_pad * itemsize                   # double-buffered out
             + (E_tile * F_pad * 4 if use_scratch else 0)    # f32 accumulator
             + 2 * E_tile * 128 * 4)                         # idx block (lanes 2->128)
    remaining = max(budget - fixed, 64 * 1024)
    # Per-unit-tile_n cost: double-buffered x block + sel/iota/mask temporaries.
    per_n = 2 * F_pad * itemsize + 8 * E_tile
    tile_n_cap = max(256, (remaining // per_n) // 256 * 256)

    N8 = _round_up(N, 8)
    if N8 <= tile_n_cap:
        tile_n = N8                              # small graph: one snug tile
        n_tiles = 1
    else:
        n_tiles = pl.cdiv(N, tile_n_cap)
        tile_n = _round_up(pl.cdiv(N, n_tiles), 256)   # MXU/lane aligned
        n_tiles = pl.cdiv(N, tile_n)
    N_pad = n_tiles * tile_n

    # ---- pad operands -------------------------------------------------------
    x = inputs
    if (N_pad, F_pad) != (N, F):
        # Zero padding is exact: padded vertices are never referenced by valid
        # edge indices and would contribute zero anyway.
        x = jnp.pad(x, ((0, 0), (0, N_pad - N), (0, F_pad - F)))

    idx = unpool_idx.astype(jnp.int32)
    if E_pad != E:
        # Padded edges use -1: they match no one-hot column -> zero rows,
        # sliced off below.
        idx = jnp.pad(idx, ((0, E_pad - E), (0, 0)), constant_values=-1)

    # ---- pallas_call --------------------------------------------------------
    passes = 6 if precision == lax.Precision.HIGHEST else 1
    cost = pl.CostEstimate(
        flops=2 * B * E_pad * N_pad * F_pad * passes,
        transcendentals=0,
        bytes_accessed=(B * e_tiles * N_pad * F_pad * itemsize   # x re-streamed per edge tile
                        + B * E_pad * F_pad * itemsize           # out
                        + B * e_tiles * n_tiles * E_tile * 2 * 4),  # idx
    )

    midpoints = pl.pallas_call(
        functools.partial(_edge_midpoint_kernel, precision=precision),
        out_shape=jax.ShapeDtypeStruct((B, E_pad, F_pad), dtype),
        grid=(B, e_tiles, n_tiles),
        in_specs=[
            pl.BlockSpec((E_tile, 2), lambda b, e, n: (e, 0)),
            pl.BlockSpec((1, tile_n, F_pad), lambda b, e, n: (b, n, 0)),
        ],
        out_specs=pl.BlockSpec((1, E_tile, F_pad), lambda b, e, n: (b, e, 0)),
        scratch_shapes=([pltpu.VMEM((E_tile, F_pad), jnp.float32)]
                        if use_scratch else []),
        compiler_params=pltpu.CompilerParams(
            dimension_semantics=("parallel", "parallel", "arbitrary"),
            vmem_limit_bytes=int(vmem_limit),
        ),
        cost_estimate=cost,
    )(idx, x)

    midpoints = midpoints[:, :E, :F]
    # Pass-through concat done by XLA: keeps the kernel's store path dense and
    # avoids round-tripping the whole N*F slab through VMEM.
    return jnp.concatenate([inputs, midpoints], axis=1)


def _reference(inputs, unpool_idx):
    # Pure-JAX reference mirroring the PyTorch forward.
    gathered = inputs[:, unpool_idx]            # (B, E, 2, F)
    new_vertices = 0.5 * gathered.sum(axis=2)   # (B, E, F)
    return jnp.concatenate([inputs, new_vertices], axis=1)


if __name__ == "__main__":
    key = jax.random.PRNGKey(0)
    k_x, k_idx, k_x2, k_idx2 = jax.random.split(key, 4)

    # Test 1: f32, single vertex tile, scratch-less (in-place) accumulation,
    # batch + edge-tile axes parallel.
    B, N, F, E = 2, 16, 128, 8
    x = jax.random.normal(k_x, (B, N, F), dtype=jnp.float32)
    unpool_idx = jax.random.randint(k_idx, (E, 2), 0, N, dtype=jnp.int32)

    out = jax.block_until_ready(graph_unpooling(x, unpool_idx))
    ref = _reference(x, unpool_idx)
    assert out.shape == (B, N + E, F), out.shape
    np.testing.assert_allclose(np.asarray(out), np.asarray(ref),
                               rtol=1e-6, atol=1e-5)

    # Test 2: bf16, ragged F (padded to 128 and sliced back), multi vertex-tile
    # reduction (forced via a tiny VMEM budget), B=1 so the edge-tile axis
    # carries the parallelism (v7x second TensorCore).
    B2, N2, F2, E2 = 1, 300, 24, 20
    x2 = jax.random.normal(k_x2, (B2, N2, F2),
                           dtype=jnp.float32).astype(jnp.bfloat16)
    idx2 = jax.random.randint(k_idx2, (E2, 2), 0, N2, dtype=jnp.int32)

    out2 = jax.block_until_ready(
        graph_unpooling(x2, idx2, vmem_budget_bytes=256 * 1024))
    ref2 = _reference(x2.astype(jnp.float32), idx2).astype(jnp.bfloat16)
    assert out2.shape == (B2, N2 + E2, F2), out2.shape
    np.testing.assert_allclose(np.asarray(out2.astype(jnp.float32)),
                               np.asarray(ref2.astype(jnp.float32)),
                               rtol=1e-2, atol=1e-2)

    print("KERNEL_OK")
</pallas_src>

<mosaic_0001>
module attributes {stable_mosaic.version = 11 : i64} {
  func.func @_edge_midpoint_kernel(%arg0: i32, %arg1: i32, %arg2: i32, %arg3: memref<8x2xi32, #tpu.memory_space<vmem>>, %arg4: memref<1x16x128xf32, #tpu.memory_space<vmem>>, %arg5: memref<1x8x128xf32, #tpu.memory_space<vmem>>) attributes {dimension_semantics = [#tpu.dimension_semantics<parallel>, #tpu.dimension_semantics<parallel>, #tpu.dimension_semantics<arbitrary>], iteration_bounds = array<i64: 2, 1, 1>, scalar_prefetch = 0 : i64, scratch_operands = 0 : i64, tpu.core_type = #tpu.core_type<tc>, window_params = [{transform_indices = @transform_0, window_bounds = array<i64: 8, 2>}, {transform_indices = @transform_1, window_bounds = array<i64: 1, 16, 128>}, {transform_indices = @transform_2, window_bounds = array<i64: 1, 8, 128>}]} {
    %c0 = arith.constant 0 : index
    %c0_0 = arith.constant 0 : index
    %c0_1 = arith.constant 0 : index
    %0 = vector.load %arg4[%c0, %c0_0, %c0_1] : memref<1x16x128xf32, #tpu.memory_space<vmem>>, vector<1x16x128xf32>
    %1 = vector.shape_cast %0 : vector<1x16x128xf32> to vector<16x128xf32>
    %c0_2 = arith.constant 0 : index
    %c0_3 = arith.constant 0 : index
    %2 = vector.load %arg3[%c0_2, %c0_3] : memref<8x2xi32, #tpu.memory_space<vmem>>, vector<8x2xi32>
    %c16_i32 = arith.constant 16 : i32
    %3 = arith.muli %arg2, %c16_i32 : i32
    %4 = vector.broadcast %3 : i32 to vector<8x2xi32>
    %5 = arith.subi %2, %4 : vector<8x2xi32>
    %6 = vector.extract_strided_slice %5 {offsets = [0, 0], sizes = [8, 1], strides = [1, 1]} : vector<8x2xi32> to vector<8x1xi32>
    %7 = vector.extract_strided_slice %5 {offsets = [0, 1], sizes = [8, 1], strides = [1, 1]} : vector<8x2xi32> to vector<8x1xi32>
    %8 = tpu.iota {dimensions = array<i32: 1>} : vector<8x16xi32>
    %9 = vector.broadcast %6 : vector<8x1xi32> to vector<8x16xi32>
    %10 = arith.cmpi eq, %8, %9 : vector<8x16xi32>
    %11 = arith.extui %10 : vector<8x16xi1> to vector<8x16xi32>
    %12 = arith.sitofp %11 : vector<8x16xi32> to vector<8x16xf32>
    %13 = vector.broadcast %7 : vector<8x1xi32> to vector<8x16xi32>
    %14 = arith.cmpi eq, %8, %13 : vector<8x16xi32>
    %15 = arith.extui %14 : vector<8x16xi1> to vector<8x16xi32>
    %16 = arith.sitofp %15 : vector<8x16xi32> to vector<8x16xf32>
    %17 = arith.addf %12, %16 : vector<8x16xf32>
    %cst = arith.constant dense<0.000000e+00> : vector<8x128xf32>
    %18 = tpu.matmul %17, %1, %cst {dimension_numbers = #tpu.dot_dimension_numbers<[1], [0], [0], [1], [0, 0, 1, 1], [], []>, precision = #tpu.contract_precision<fp32>} : vector<8x16xf32>, vector<16x128xf32>, vector<8x128xf32> -> vector<8x128xf32>
    %c0_i32 = arith.constant 0 : i32
    %19 = arith.cmpi eq, %arg2, %c0_i32 : i32
    %20 = arith.extui %19 : i1 to i32
    %c0_i32_4 = arith.constant 0 : i32
    %21 = arith.cmpi ne, %20, %c0_i32_4 : i32
    scf.if %21 {
      %cst_13 = arith.constant 0.000000e+00 : f32
      %31 = vector.broadcast %cst_13 : f32 to vector<1x8x128xf32>
      %c0_14 = arith.constant 0 : index
      %c0_15 = arith.constant 0 : index
      %c0_16 = arith.constant 0 : index
      %32 = vector.load %arg5[%c0_14, %c0_15, %c0_16] : memref<1x8x128xf32, #tpu.memory_space<vmem>>, vector<1x8x128xf32>
      tpu.vector_store %arg5[%c0_14, %c0_15, %c0_16], %31 {strides = array<i32>} : memref<1x8x128xf32, #tpu.memory_space<vmem>>, vector<1x8x128xf32>,
    } else {
    }
    %c0_5 = arith.constant 0 : index
    %c0_6 = arith.constant 0 : index
    %c0_7 = arith.constant 0 : index
    %22 = vector.load %arg5[%c0_5, %c0_6, %c0_7] : memref<1x8x128xf32, #tpu.memory_space<vmem>>, vector<1x8x128xf32>
    %23 = vector.shape_cast %22 : vector<1x8x128xf32> to vector<8x128xf32>
    %24 = arith.addf %23, %18 : vector<8x128xf32>
    %c0_8 = arith.constant 0 : index
    %c0_9 = arith.constant 0 : index
    %c0_10 = arith.constant 0 : index
    %25 = vector.load %arg5[%c0_8, %c0_9, %c0_10] : memref<1x8x128xf32, #tpu.memory_space<vmem>>, vector<1x8x128xf32>
    %26 = vector.shape_cast %25 : vector<1x8x128xf32> to vector<8x128xf32>
    %27 = vector.shape_cast %24 : vector<8x128xf32> to vector<1x8x128xf32>
    tpu.vector_store %arg5[%c0_8, %c0_9, %c0_10], %27 {strides = array<i32>} : memref<1x8x128xf32, #tpu.memory_space<vmem>>, vector<1x8x128xf32>,
    %c0_i32_11 = arith.constant 0 : i32
    %28 = arith.cmpi eq, %arg2, %c0_i32_11 : i32
    %29 = arith.extui %28 : i1 to i32
    %c0_i32_12 = arith.constant 0 : i32
    %30 = arith.cmpi ne, %29, %c0_i32_12 : i32
    scf.if %30 {
      %c0_13 = arith.constant 0 : index
      %c0_14 = arith.constant 0 : index
      %c0_15 = arith.constant 0 : index
      %31 = vector.load %arg5[%c0_13, %c0_14, %c0_15] : memref<1x8x128xf32, #tpu.memory_space<vmem>>, vector<1x8x128xf32>
      %cst_16 = arith.constant 5.000000e-01 : f32
      %32 = vector.broadcast %cst_16 : f32 to vector<1x8x128xf32>
      %33 = arith.mulf %31, %32 : vector<1x8x128xf32>
      %c0_17 = arith.constant 0 : index
      %c0_18 = arith.constant 0 : index
      %c0_19 = arith.constant 0 : index
      %34 = vector.load %arg5[%c0_17, %c0_18, %c0_19] : memref<1x8x128xf32, #tpu.memory_space<vmem>>, vector<1x8x128xf32>
      tpu.vector_store %arg5[%c0_17, %c0_18, %c0_19], %33 {strides = array<i32>} : memref<1x8x128xf32, #tpu.memory_space<vmem>>, vector<1x8x128xf32>,
    } else {
    }
    return
  }
  func.func @transform_0(%arg0: i32, %arg1: i32, %arg2: i32) -> (i32, i32) {
    %c0_i32 = arith.constant 0 : i32
    %c0_i32_0 = arith.constant 0 : i32
    return %arg1, %c0_i32 : i32, i32
  }
  func.func @transform_1(%arg0: i32, %arg1: i32, %arg2: i32) -> (i32, i32, i32) {
    %c0_i32 = arith.constant 0 : i32
    %c0_i32_0 = arith.constant 0 : i32
    return %arg0, %arg2, %c0_i32 : i32, i32, i32
  }
  func.func @transform_2(%arg0: i32, %arg1: i32, %arg2: i32) -> (i32, i32, i32) {
    %c0_i32 = arith.constant 0 : i32
    %c0_i32_0 = arith.constant 0 : i32
    return %arg0, %arg1, %c0_i32 : i32, i32, i32
  }
}

</mosaic_0001>

<bundles_post_ra>
// kernel: tpu_custom_call.1
= control target key start
LH: loop header
LB: loop body
LE: loop exit
PB: predicated region body
PF: predicated region fallthrough
CT: control target
= control target key end

     0   :  { %7 = vsyncpa [#allocation3], 0  ;;  %s1306_s0 = inlined_call_operand.vmem [shape: s32[8,2], index: 0, kind: input, shape index: {}]   ;;  %s1307_s1 = inlined_call_operand.hbm [shape: f32[2,16,128], index: 1, kind: input, shape index: {}]   ;;  %s1308_s2 = inlined_call_operand.hbm [shape: f32[2,8,128], index: 2, kind: output, shape index: {}]  }
   0x1   :  { %9 = vsyncpa [#allocation3 + $0x1], 0 }
   0x2   :  { %10 = vsyncpa [#allocation4], 0 }
   0x3   :  { %12 = vsyncpa [#allocation4 + $0x1], 0  ;;  %s1123_s9 = smov 0   ;;  %s1125_s10 = smov 0  }
   0x4   :  { %s1127_s11 = smov 0   ;;  %s1129_s12 = smov 0  }
   0x5   :  { %s1131_s13 = smov 0   ;;  %s1133_s14 = smov 0  }
   0x6 LB: > { %s818_s15 = sadd.s32 4294967295, %s1097_s14   ;;  %s819_s16 = sadd.s32 4294967294, %s1097_s14   ;;  %s1097_s14 = sphi %s1133_s14, %s18_s14   ;;  %s1093_s13 = sphi %s1131_s13, %s1323_s13   ;;  %s1089_s12 = sphi %s1129_s12, %s1322_s12   ;;  %s1085_s11 = sphi %s1127_s11, %s1321_s11   ;;  %s1081_s10 = sphi %s1125_s10, %s1320_s10   ;;  %s1077_s9 = sphi %s1123_s9, %s1319_s9  }
   0x7   : > { %s37_s17 = sadd.s32 1, %s1093_s13  ;;  %s72_s18 = sadd.s32 1, %s1085_s11 }
   0x8   : > { %p39_p0 = scmp.ge.s32.totalorder %s37_s17, 2  ;;  %p79_p1 = scmp.ne.s32.totalorder %s1085_s11, %s1081_s10 }
   0x9   : > { %p80_p2 = scmp.eq.s32.totalorder %s1097_s14, 0  ;;  %p85_p3 = scmp.ne.s32.totalorder %s1081_s10, %s1077_s9 }
   0xa   : > { %s1325_s17 = smov (%p39_p0, %s37_s17), 0  ;;  %p86_p5 = scmp.eq.s32.totalorder %s818_s15, 0 }
   0xb   : > { %p1164_p4 = por %p80_p2, %p79_p1  ;;  %s67_s20 = ssub.s32 %s1093_s13, %s1325_s17 }
   0xc   : > { %p111_p6 = scmp.eq.s32.totalorder %s818_s15, 1  ;;  %p70_p7 = scmp.eq.s32.totalorder %s67_s20, 0 }
   0xd   : > { %p1170_p8 = por %p86_p5, %p85_p3  ;;  %p117_p10 = scmp.eq.s32.totalorder %s819_s16, 1 }
   0xe   : > { %p1174_p9 = por %p111_p6, %p79_p1  ;;  %p926_p13 = scmp.lt.s32.totalorder %s1097_s14, 2 }
   0xf   : > { %s1179_s23 = scalar_select %p70_p7, %s1085_s11, %s72_s18  }
  0x10   : > { %s1312_s22 = scalar_select %p1174_p9, 1, 0 }
  0x11   : > { %p1181_p11 = por %p117_p10, %p85_p3  ;;  %s144_s25 = sand.u32 1, %s1085_s11  }
  0x12   : > { %s823_s26 = sshll.u32 %s144_s25, 4  ;;  %s835_s27 = sshll.u32 %s1093_s13, 8 }
  0x13   : > { %s1313_s24 = scalar_select %p1181_p11, 1, 0 }
  0x14   : > { %s1192_s30 = scalar_lea.hbm %s1307_s1, %s835_s27  ;;  %s148_s3 = scalar_lea.vmem [#allocation2], %s823_s26 }
  0x15   : > { %s157_s4 = sshll.u32 %s148_s3, 4  ;;  %p1198_p0 = pnand %p926_p13, %p1164_p4  ;;  %s1194_s4 = int_to_ptr.vmem [resolvable:$true] %s157_s4 }
  0x16   : > { %s1203_s6 = scalar_lea.sflag [#allocation3], %s144_s25  ;;  %s985_s7 = scalar_lea.hbm %s1192_s30, 256 }
  0x17   : > { %p986_p2 = scmp.ne.s32.totalorder %s1192_s30, %s985_s7  ;;  %p987_p3 = pneg %p1198_p0 }
  0x18   : > { %s990_s16 = scalar_lea.hbm %s1307_s1, 512  ;;  %p991_p4 = scmp.lt.u32.totalorder %s1192_s30, %s1307_s1 }
  0x19   : > { %p988_p5 = pnand %p987_p3, %p986_p2  ;;  %p992_p7 = scmp.lt.u32.totalorder %s990_s16, %s985_s7 }
  0x1a   : > { %p994_p13 = scmp.lt.u32.totalorder %s985_s7, %s1192_s30 }
  0x1b   : > { %p989_p6 = pneg %p988_p5  ;;  %p993_p10 = por %p992_p7, %p991_p4 }
  0x1d   : > { %p995_p12 = por %p994_p13, %p993_p10 }
  0x1f   : > { %p996_p1 = pnand %p995_p12, %p989_p6 }
  0x21   : > { %999 = shalt.err (!%p996_p1)
}
  0x22   : > { %s1000_s20 = scalar_lea.vmem %s1194_s4, 256  ;;  %s1099_s25 = smov [#allocation2]  }
  0x23   : > { %p1001_p2 = scmp.ne.s32.totalorder %s1194_s4, %s1000_s20  ;;  %s1005_s26 = sshll.u32 %s1099_s25, 4  ;;  %s1006_s26 = int_to_ptr.vmem [resolvable:$false] %s1005_s26 }
  0x24   : > { %s1007_s27 = scalar_lea.vmem %s1006_s26, 512  ;;  %p1008_p9 = scmp.lt.s32.totalorder %s1194_s4, %s1006_s26 }
  0x25   : > { %p1003_p5 = pnand %p1001_p2, %p987_p3  ;;  %p1009_p4 = scmp.lt.s32.totalorder %s1007_s27, %s1000_s20 }
  0x27   : > { %p1004_p11 = pneg %p1003_p5  ;;  %p1010_p7 = por %p1009_p4, %p1008_p9 }
  0x29   : > { %p1011_p10 = pnand %p1010_p7, %p1004_p11 }
  0x2b   : > { %1014 = shalt.err (!%p1011_p10)
}
  0x2c   : > { %s1100_s28 = smov 128   ;;  %s1101_s29 = smov 8  }
  0x2d   : > { %921 = dma.hbm_to_vmem [thread:$0]  (!%p1198_p0), %s1192_s30, 256, %s1194_s4, %s1203_s6, %s1100_s28, %s1100_s28, %s1101_s29  }
  0x2e   : > { %p165_p12 = scmp.lt.s32.totalorder %s1097_s14, 3  ;;  %p1315_p1 = scmp.ge.s32.totalorder %s1097_s14, 1 }
  0x30   : > { %p166_p3 = pnand %p1315_p1, %p165_p12 }
  0x31   : > { %s1235_s3 = sand.u32 (!%p166_p3), 1, %s1081_s10  }
  0x32   : > { %169 = sbr.rel (%p166_p3) target bundleno = 448 (0x1c0), region = 28  ;;  %s827_s7 = sshll.u32 (!%p166_p3), %s1235_s3, 4 }
  0x33   : > { %s172_s8 = scalar_lea.sflag (!%p166_p3), [#allocation3], %s1235_s3  ;;  %s175_s15 = scalar_lea.vmem (!%p166_p3), [#allocation2], %s827_s7 }
  0x39   : > { %1068 = dma.done.wait (%p1170_p8), %s172_s8, 256  }
  0x3a   : > { %1070 = vsyncadd (%p1170_p8), %s172_s8, 4294967040  ;;  %v1102_v0 = vmov 0   ;;  %v207_v1 = vld [vmem:[%s1306_s0] sm:$0xff]  ;;  %v206_v3 = vld [vmem:[%s175_s15 + $0x8] sm:$0xff]  ;;  %v1103_v8 = vmov 1   ;;  %v1104_v13 = vmov 0.0|0.0   ;;  %v211_v21 = vlaneseq }
  0x3b   : > { %983 = vset.pattern.permute.xlu0 %v1102_v0  ;;  %v205_v2 = vld [vmem:[%s175_s15] sm:$0xff]  ;;  %v234_v5 = vand.u32 4294901760, %v206_v3  ;;  %899 = vmatprep.subr.bf16.mxu1 %v1104_v13  ;;  %vm1105_vm0 = vmmov 0   ;;  %v1106_v17 = vmov 0.0   ;;  %vm226_vm3 = vcmask 130048   ;;  %s828_s21 = sshll.u32 %s1235_s3, 3 }
  0x3c   : > { %214 = vperm.xlu0 %983, %v207_v1   ;;  %v231_v4 = vand.u32 4294901760, %v205_v2  ;;  %896 = vmatprep.subr.bf16.mxu0 %v1104_v13  ;;  %v212_v22 = vand.u32 127, %v211_v21  ;;  %s832_s5 = sshll.u32 %s1089_s12, 7  ;;  %s199_s6 = scalar_lea.vmem [#allocation5], %s828_s21 }
  0x3d   : > { %v316_v7 = vsub.f32 %v206_v3, %v234_v5  ;;  %865 = vmatprep.mubr.msk.f32.mxu1 %vm1105_vm0, %v1106_v17  ;;  %858 = vmatprep.mubr.msk.f32.mxu0 %vm1105_vm0, %v1106_v17  ;;  %s718_s16 = sshll.u32 %s199_s6, 4  ;;  %s1257_s20 = scalar_lea.hbm %s1308_s2, %s832_s5  ;;  %s1259_s16 = int_to_ptr.vmem [resolvable:$true] %s718_s16 }
  0x3e   : > { %v309_v6 = vsub.f32 %v205_v2, %v231_v4  ;;  %v897_v18 = vpack.c.bf16 %v234_v5, %v231_v4  ;;  %s704_s25 = scalar_lea.sflag [#allocation4], %s1235_s3  ;;  %s1015_s26 = scalar_lea.vmem %s1259_s16, 128 }
  0x3f   : > { %v317_v10 = vand.u32 4294901760, %v316_v7  ;;  %p1016_p8 = scmp.ne.s32.totalorder %s1259_s16, %s1015_s26  ;;  %p1316_p9 = scmp.ne.s32.totalorder %s1312_s22, 0 }
  0x40   : > { %984 = vset.pattern.permute.xlu0 %v1103_v8  ;;  %v310_v9 = vand.u32 4294901760, %v309_v6  ;;  %898 = vmatpush3.bf16.msra.mxu0 %v897_v18  ;;  %v903_v19 = vpack.c.bf16 %v316_v7, %v309_v6  ;;  %s1107_s12 = smov [#allocation5]  }
  0x41   : > { %220 = vperm.xlu0 %984, %v207_v1   ;;  %v318_v12 = vsub.f32 %v316_v7, %v317_v10  ;;  %902 = vmatprep.subr.bf16.mxu0 %v1104_v13  ;;  %p1017_p11 = pnand %p1016_p8, %p1316_p9  ;;  %s1019_s27 = sshll.u32 %s1107_s12, 4  ;;  %s1020_s27 = int_to_ptr.vmem [resolvable:$false] %s1019_s27 }
  0x42   : > { %v311_v11 = vsub.f32 %v309_v6, %v310_v9  ;;  %v909_v20 = vpack.c.bf16 %v317_v10, %v310_v9  ;;  %s1021_s28 = scalar_lea.vmem %s1020_s27, 256  ;;  %p1022_p6 = scmp.lt.s32.totalorder %s1259_s16, %s1020_s27 }
  0x43   : > { %v319_v15 = vand.u32 4294901760, %v318_v12  ;;  %p1018_p0 = pneg %p1017_p11  ;;  %p1023_p13 = scmp.lt.s32.totalorder %s1021_s28, %s1015_s26 }
  0x44   : > { %v312_v14 = vand.u32 4294901760, %v311_v11 }
  0x45   : > { %p1024_p2 = por %p1023_p13, %p1022_p6 }
  0x46   : > { %v900_v16 = vpack.c.bf16 %v319_v15, %v312_v14 }
  0x47   : > { %p1025_p5 = pnand %p1024_p2, %p1018_p0 }
  0x48   : > { %901 = vmatpush3.bf16.msra.mxu1 %v900_v16 }
  0x49   : > { %905 = vmatprep.subr.bf16.mxu1 %v1104_v13 }
  0xbb   : > { %v215_v23 = vpop.permute.xlu0 %214 }
  0xbc   : > { %vm216_vm1 = vcmp.eq.s32.totalorder %v212_v22, %v215_v23 }
  0xbd   : > { %v829_v25 = vsel %vm216_vm1, 1.0, %v1106_v17 }
  0xc0   : > { %v221_v24 = vpop.permute.xlu0 %220 }
  0xc1   : > { %vm222_vm2 = vcmp.eq.s32.totalorder %v212_v22, %v221_v24 }
  0xc2   : > { %v830_v26 = vsel %vm222_vm2, 1.0, %v1106_v17 }
  0xc3   : > { %v225_v27 = vadd.f32 %v830_v26, %v829_v25 }
  0xc5   : > { %v228_v28 = vsel %vm226_vm3, %v225_v27, 0 }
  0xc6   : > { %v297_v29 = vand.u32 4294901760, %v228_v28 }
  0xc8   : > { %v298_v30 = vsub.f32 %v228_v28, %v297_v29  ;;  %866 = vmatmul.mubr.f32.vlgmr.msra.gmra.mrb[0].mxu1 %v297_v29 }
  0xc9   : > { %907 = vmatpush3.bf16.msra.mxu1 %v897_v18  ;;  %879 = vmatprep.mubr.msk.f32.mxu1 %vm1105_vm0, %v1106_v17 }
  0xca   : > { %v299_v31 = vand.u32 4294901760, %v298_v30  ;;  %911 = vmatprep.subr.bf16.mxu1 %v1104_v13 }
  0xcc   : > { %880 = vmatmul.mubr.f32.vlgmr.msra.gmra.mrb[2].mxu1 %v299_v31  ;;  %v300_v32 = vsub.f32 %v298_v30, %v299_v31 }
  0xcd   : > { %913 = vmatpush3.bf16.msra.mxu1 %v897_v18  ;;  %893 = vmatprep.mubr.msk.f32.mxu1 %vm1105_vm0, %v1106_v17 }
  0xce   : > { %v301_v33 = vand.u32 4294901760, %v300_v32 }
  0xd0   : > { %859 = vmatmul.mubr.f32.vlgmr.msra.gmra.mrb[0].mxu0 %v301_v33  ;;  %894 = vmatmul.mubr.f32.vlgmr.msra.gmra.mrb[4].mxu1 %v297_v29 }
  0xd1   : > { %904 = vmatpush3.bf16.msra.mxu0 %v903_v19  ;;  %872 = vmatprep.mubr.msk.f32.mxu0 %vm1105_vm0, %v1106_v17 }
  0xd2   : > { %908 = vmatprep.subr.bf16.mxu0 %v1104_v13 }
  0xd4   : > { %873 = vmatmul.mubr.f32.vlgmr.msra.gmra.mrb[2].mxu0 %v298_v30 }
  0xd5   : > { %910 = vmatpush3.bf16.msra.mxu0 %v909_v20  ;;  %886 = vmatprep.mubr.msk.f32.mxu0 %vm1105_vm0, %v1106_v17 }
  0xd8   : > { %887 = vmatmul.mubr.f32.vlgmr.msra.gmra.mrb[4].mxu0 %v297_v29 }
 0x19b   : > { %v384_v34 = vpop.f32.mrb[0].mxu1 }
 0x19c   : > { %v867_v35 = vpop.f32.mrb[1].mxu1 }
 0x19f   : > { %v535_v36 = vpop.f32.mrb[2].mxu1 }
 0x1a0   : > { %v881_v37 = vpop.f32.mrb[3].mxu1 }
 0x1a3   : > { %v303_v38 = vpop.f32.mrb[0].mxu0  ;;  %v685_v39 = vpop.f32.mrb[4].mxu1 }
 0x1a4   : > { %v385_v40 = vadd.f32 %v384_v34, %v303_v38  ;;  %v860_v41 = vpop.f32.mrb[1].mxu0  ;;  %v895_v42 = vpop.f32.mrb[5].mxu1 }
 0x1a7   : > { %v460_v43 = vpop.f32.mrb[2].mxu0 }
 0x1a8   : > { %v461_v44 = vadd.f32 %v460_v43, %v385_v40  ;;  %v874_v45 = vpop.f32.mrb[3].mxu0 }
 0x1aa   : > { %v536_v46 = vadd.f32 %v535_v36, %v461_v44 }
 0x1ab   : > { %v612_v47 = vpop.f32.mrb[4].mxu0 }
 0x1ac   : > { %v613_v48 = vadd.f32 %v612_v47, %v536_v46  ;;  %v888_v49 = vpop.f32.mrb[5].mxu0 }
 0x1ae   : > { %v686_v50 = vadd.f32 %v685_v39, %v613_v48 }
 0x1b0   : > { %v701_v51 = vmul.f32 0.5, %v686_v50 }
 0x1b2   : > { %702 = vst [vmem:[%s199_s6] sm:$0xff] %v701_v51 }
 0x1b3   : > { %1028 = shalt.err (!%p1025_p5)
}
 0x1b4   : > { %s1029_s29 = scalar_lea.hbm %s1257_s20, 128  ;;  %s1033_s8 = scalar_lea.hbm %s1308_s2, 256 }
 0x1b5   : > { %p1030_p4 = scmp.ne.s32.totalorder %s1257_s20, %s1029_s29  ;;  %p1034_p12 = scmp.lt.u32.totalorder %s1257_s20, %s1308_s2 }
 0x1b6   : > { %p1035_p1 = scmp.lt.u32.totalorder %s1033_s8, %s1029_s29  ;;  %p1037_p8 = scmp.lt.u32.totalorder %s1029_s29, %s1257_s20 }
 0x1b7   : > { %p1031_p7 = pnand %p1030_p4, %p1316_p9 }
 0x1b8   : > { %p1036_p3 = por %p1035_p1, %p1034_p12 }
 0x1b9   : > { %p1032_p10 = pneg %p1031_p7 }
 0x1ba   : > { %p1038_p11 = por %p1037_p8, %p1036_p3 }
 0x1bc   : > { %p1039_p0 = pnand %p1038_p11, %p1032_p10 }
 0x1be   : > { %1042 = shalt.err (!%p1039_p0)
}
 0x1bf   : > { %916 = dma.vmem_to_hbm [thread:$0]  (%p1316_p9), %s1259_s16, 128, %s1257_s20, %s704_s25  }
 0x1c0 PF: > { %s730_s4 = sand.u32 1, %s1077_s9   ;;  %p1317_p6 = scmp.ne.s32.totalorder %s1313_s24, 0 }
 0x1c1   : > { %p1318_p13 = scmp.ge.s32.totalorder %s1097_s14, 2  ;;  %s731_s21 = scalar_lea.sflag [#allocation4], %s730_s4 }
 0x1c3   : > { %p923_p2 = pnand %p1318_p13, %p1317_p6 }
 0x1c5   : > { %1072 = dma.done.wait (!%p923_p2), %s731_s21, 128  }
 0x1c6   : > { %1074 = vsyncadd (!%p923_p2), %s731_s21, 4294967168  ;;  %s18_s14 = sadd.s32 1, %s1097_s14   ;;  %s1319_s9 = smov %s1081_s10 }
 0x1c7   : > { %p15_p5 = scmp.ge.s32.totalorder %s18_s14, 4   ;;  %s1320_s10 = smov %s1085_s11 }
 0x1c8   : > { %s1321_s11 = smov %s1179_s23  ;;  %s1322_s12 = smov %s1093_s13 }
 0x1c9   : > { %s1323_s13 = smov %s1325_s17  ;;  %17 = sbr.rel (!%p15_p5) target bundleno = 6 (0x6), region = 84 }
 0x1d0   :  { %736 = vsyncpa [#allocation3], 1 }
 0x1d1   :  { %738 = vsyncpa [#allocation3 + $0x1], 1 }
 0x1d2   :  { %739 = vsyncpa [#allocation4], 1 }
 0x1d3   :  { %741 = vsyncpa [#allocation4 + $0x1], 1 }

</bundles_post_ra>
